<compile_context>
chip_gen: v7x
topology: tpu7x:2x2x1
jax: 0.10.0
libtpu: 0.0.40
codegen_flags: <defaults>
</compile_context>

<pallas_src>
import functools

import jax
import jax.numpy as jnp
from jax import lax
from jax.experimental import pallas as pl
from jax.experimental.pallas import tpu as pltpu


def _round_up(v, m):
    return (v + m - 1) // m * m


def _gcn_kernel(*refs, support_len, order, bt, n, n_pad, c_in, c_in_pad,
                proj_chunk, compute_dtype):
    # refs = (x_ref, a_ref_0..a_ref_{S-1}, w_ref, b_ref, o_ref, h_ref)
    # x_ref: (Bt, C_in, N)        a_ref_s: (Bt, N, N)        (compute_dtype)
    # w_ref: (C_out, K*C_in_pad)  b_ref: (C_out, 1) f32
    # o_ref: (C_out, Bt*N_pad)    h_ref: VMEM scratch (K*C_in_pad, Bt*N_pad)
    x_ref = refs[0]
    a_refs = refs[1:1 + support_len]
    w_ref, b_ref, o_ref, h_ref = refs[1 + support_len:]

    k_total = order * support_len + 1
    total_cols = bt * n_pad

    # Zero only the padded ROW bands (rows never written below but mixed into
    # every output column by the projection; W_pad has zero columns there, but
    # NaN*0 would still poison).  Done every grid step (cheap) so each
    # TensorCore's private scratch is initialised even under megacore sharding.
    pad_rows = c_in_pad - c_in
    if pad_rows:
        zband = jnp.zeros((pad_rows, total_cols), compute_dtype)
        for k in range(k_total):
            h_ref[pl.ds(k * c_in_pad + c_in, pad_rows), :] = zband
    # NOTE: junk in the padded COLUMNS of active rows only affects the dropped
    # output columns (matmul does not mix columns), so no column zeroing needed.

    def per_batch(b):
        col0 = b * n_pad
        if not isinstance(col0, int):
            col0 = pl.multiple_of(col0, 128)        # n_pad is a multiple of 128
        cols = pl.ds(col0, n)
        xb = x_ref[b]                                # (C_in, N), compute_dtype
        h_ref[pl.ds(0, c_in), cols] = xb             # k = 0 slice
        k = 1
        for s in range(support_len):
            a = a_refs[s][b]                         # (N, N), compute_dtype
            x1 = jnp.dot(xb, a, preferred_element_type=jnp.float32)   # f32
            h_ref[pl.ds(k * c_in_pad, c_in), cols] = x1.astype(compute_dtype)
            k += 1
            for _ in range(2, order + 1):
                # chain kept in f32 for accuracy; only the slab copy is cast
                x2 = jnp.dot(x1, a, preferred_element_type=jnp.float32)
                h_ref[pl.ds(k * c_in_pad, c_in), cols] = x2.astype(compute_dtype)
                k += 1
                x1 = x2

    if bt <= 2:
        for b in range(bt):                          # tiny chunk: unrolled
            per_batch(b)
    else:
        def body(b, carry):
            per_batch(b)
            return carry
        lax.fori_loop(0, bt, body, 0, unroll=2)      # bounds vreg live ranges

    # Fused 1x1 Conv1d projection, chunked over the lane axis so bias-add and
    # cast fuse into a few vregs per chunk (no monolithic f32 VMEM temp).
    w = w_ref[...]                                   # (C_out, K*C_in_pad)
    bvec = b_ref[...]                                # (C_out, 1) f32
    n_chunks = total_cols // proj_chunk
    for c in range(n_chunks):
        col = c * proj_chunk                         # static, 128-aligned
        hc = h_ref[:, pl.ds(col, proj_chunk)]
        proj = jnp.dot(w, hc, preferred_element_type=jnp.float32)
        o_ref[:, pl.ds(col, proj_chunk)] = (proj + bvec).astype(o_ref.dtype)
    # TODO(synk): F.dropout is stochastic in training mode; implemented as
    # identity (eval-mode semantics) here.


def gcn_t2s_forward(x, supports, weight, bias, *, order=2,
                    compute_dtype=jnp.bfloat16, batch_tile=None):
    """x: (B, C_in, N); supports: list of S arrays (B, N, N);
    weight: (C_out, C_cat[, 1]) with C_cat = (order*S + 1)*C_in; bias: (C_out,).
    Returns (B, C_out, N) in x's original dtype."""
    B, C_in, N = x.shape
    S = len(supports)
    C_out = weight.shape[0]
    C_cat = weight.shape[1]
    K = order * S + 1
    assert C_cat == K * C_in

    out_dtype = x.dtype
    cd = jnp.dtype(compute_dtype)

    # Sublane-packing granularity of compute_dtype: f32 -> 8, bf16 -> 16, 8-bit -> 32.
    sub = (8 * 4) // cd.itemsize
    C_in_pad = _round_up(C_in, sub)
    N_pad = _round_up(N, 128)

    # Cast the big operands once (callers should already pass compute_dtype to
    # skip this extra HBM pass); halves DMA traffic of the supports vs f32.
    if x.dtype != cd:
        x = x.astype(cd)
    supports = [a if a.dtype == cd else a.astype(cd) for a in supports]

    # Repack the (tiny) 1x1-conv weight: zero columns in padded channel slots so
    # padded slab rows contribute nothing.
    w3 = weight.reshape(C_out, K, C_in)
    w_pad = jnp.pad(w3, ((0, 0), (0, 0), (0, C_in_pad - C_in))).reshape(
        C_out, K * C_in_pad).astype(cd)
    b2 = bias.reshape(C_out, 1).astype(jnp.float32)

    # Capacity-aware VMEM budgeting (v7x: 64 MiB/TC, v5e/v6e: 128 MiB).
    try:
        vmem_cap = int(pltpu.get_tpu_info().vmem_capacity_bytes)
    except Exception:
        vmem_cap = 64 * 1024 * 1024                  # conservative fallback
    budget = (vmem_cap * 35) // 100
    vmem_limit = min((vmem_cap * 3) // 4, vmem_cap - (8 << 20))

    out_b = jnp.dtype(out_dtype).itemsize

    def _need(d):
        blocks = 2 * d * (S * N * N + C_in * N) * cd.itemsize      # dbl-buffered inputs
        blocks += 2 * d * N_pad * C_out * out_b                    # dbl-buffered output slab
        scratch = K * C_in_pad * d * N_pad * cd.itemsize           # h slab
        consts = 2 * (C_out * K * C_in_pad * cd.itemsize + C_out * 4)
        return blocks + scratch + consts

    if batch_tile is None:
        # Keep G = B/Bt >= 2 whenever B >= 2 so v7x's second TensorCore gets work.
        bt_cap = max(1, B // 2) if B >= 2 else 1
        Bt = None
        for d in range(1, bt_cap + 1):
            if B % d:
                continue
            if _need(d) > budget:
                break                                # _need is monotone in d
            Bt = d
            if d * N_pad >= 4096 and B // d >= 2:
                break                                # enough lanes; keep G large
        if Bt is None:
            if _need(1) <= (vmem_limit * 9) // 10:
                Bt = 1                               # tight but should still fit
            else:
                # TODO(synk): add reduction-axis (N) tiling for very large graphs.
                raise NotImplementedError(
                    "GCN_t2s Pallas kernel: even a single-batch block "
                    f"({_need(1)} bytes) exceeds the VMEM budget "
                    f"({vmem_limit} bytes); N-tiling not implemented.")
    else:
        Bt = batch_tile
        assert B % Bt == 0
    G = B // Bt

    # Projection lane-chunk: whole batch elements, ~<=1024 lanes per chunk.
    cb = 1
    for d in range(Bt, 0, -1):
        if Bt % d == 0 and d * N_pad <= 1024:
            cb = d
            break
    proj_chunk = cb * N_pad

    kernel = functools.partial(
        _gcn_kernel, support_len=S, order=order, bt=Bt, n=N, n_pad=N_pad,
        c_in=C_in, c_in_pad=C_in_pad, proj_chunk=proj_chunk, compute_dtype=cd)

    in_specs = (
        [pl.BlockSpec((Bt, C_in, N), lambda i: (i, 0, 0))]
        + [pl.BlockSpec((Bt, N, N), lambda i: (i, 0, 0)) for _ in range(S)]
        + [pl.BlockSpec((C_out, K * C_in_pad), lambda i: (0, 0)),
           pl.BlockSpec((C_out, 1), lambda i: (0, 0))]
    )

    out_slab = pl.pallas_call(
        kernel,
        out_shape=jax.ShapeDtypeStruct((G, C_out, Bt * N_pad), out_dtype),
        grid=(G,),
        in_specs=in_specs,
        out_specs=pl.BlockSpec((None, C_out, Bt * N_pad), lambda i: (i, 0, 0)),
        scratch_shapes=[pltpu.VMEM((K * C_in_pad, Bt * N_pad), cd)],
        compiler_params=pltpu.CompilerParams(
            dimension_semantics=("parallel",),
            vmem_limit_bytes=int(vmem_limit)),
    )(x, *supports, w_pad, b2)

    # Un-slab the lane-dense output back to (B, C_out, N); drop padded columns.
    out = out_slab.reshape(G, C_out, Bt, N_pad)[..., :N]
    out = out.transpose(0, 2, 1, 3).reshape(B, C_out, N)
    return out


def _reference(x, supports, weight, bias, *, order=2):
    # Pure-JAX f32 reference mirroring the PyTorch forward (eval mode).
    out = [x]
    for a in supports:
        x1 = jnp.einsum("bdn,bnm->bdm", x, a)
        out.append(x1)
        for _ in range(2, order + 1):
            x2 = jnp.einsum("bdn,bnm->bdm", x1, a)
            out.append(x2)
            x1 = x2
    h = jnp.concatenate(out, axis=1)
    W2 = weight.reshape(weight.shape[0], weight.shape[1])
    return jnp.einsum("oc,bcn->bon", W2, h) + bias[None, :, None]


if __name__ == "__main__":
    # Small shapes consistent with the module (Conv1d NCL layout).
    B, C_in, N = 2, 4, 16
    support_len, order = 3, 2
    C_out = 8
    C_cat = (order * support_len + 1) * C_in                  # 28

    key = jax.random.PRNGKey(0)
    k_x, k_a, k_w, k_b = jax.random.split(key, 4)

    x = jax.random.normal(k_x, (B, C_in, N), dtype=jnp.float32)

    supports = []
    for ks in jax.random.split(k_a, support_len):
        a_raw = jax.random.uniform(ks, (B, N, N), dtype=jnp.float32)
        # row-normalize so propagation is well-scaled
        supports.append(a_raw / jnp.sum(a_raw, axis=-1, keepdims=True))

    weight = 0.1 * jax.random.normal(k_w, (C_out, C_cat, 1), dtype=jnp.float32)
    bias = 0.1 * jax.random.normal(k_b, (C_out,), dtype=jnp.float32)

    ref = _reference(x, supports, weight, bias, order=order)

    # f32 compute path: tight check against the reference.
    out_f32 = gcn_t2s_forward(x, supports, weight, bias, order=order,
                              compute_dtype=jnp.float32)
    out_f32 = jax.block_until_ready(out_f32)
    assert out_f32.shape == (B, C_out, N)
    assert out_f32.dtype == x.dtype
    assert jnp.allclose(out_f32, ref, atol=1e-5, rtol=1e-5), "f32 mismatch vs reference"

    # bf16 MXU path (default): bf16 operands, f32 accumulation, loose tolerance.
    out_bf16 = gcn_t2s_forward(x, supports, weight, bias, order=order)
    out_bf16 = jax.block_until_ready(out_bf16)
    assert out_bf16.shape == (B, C_out, N)
    assert out_bf16.dtype == x.dtype
    assert jnp.allclose(out_bf16, ref, atol=5e-2, rtol=5e-2), "bf16 mismatch vs reference"

    print("KERNEL_OK")
</pallas_src>

<mosaic_0001>
module attributes {stable_mosaic.version = 11 : i64} {
  func.func @_gcn_kernel(%arg0: i32, %arg1: memref<1x4x16xf32, #tpu.memory_space<vmem>>, %arg2: memref<1x16x16xf32, #tpu.memory_space<vmem>>, %arg3: memref<1x16x16xf32, #tpu.memory_space<vmem>>, %arg4: memref<1x16x16xf32, #tpu.memory_space<vmem>>, %arg5: memref<8x56xf32, #tpu.memory_space<vmem>>, %arg6: memref<8x1xf32, #tpu.memory_space<vmem>>, %arg7: memref<1x8x128xf32, #tpu.memory_space<vmem>>, %arg8: memref<56x128xf32, #tpu.memory_space<vmem>>) attributes {dimension_semantics = [#tpu.dimension_semantics<parallel>], iteration_bounds = array<i64: 2>, scalar_prefetch = 0 : i64, scratch_operands = 1 : i64, tpu.core_type = #tpu.core_type<tc>, window_params = [{transform_indices = @transform_0, window_bounds = array<i64: 1, 4, 16>}, {transform_indices = @transform_1, window_bounds = array<i64: 1, 16, 16>}, {transform_indices = @transform_2, window_bounds = array<i64: 1, 16, 16>}, {transform_indices = @transform_3, window_bounds = array<i64: 1, 16, 16>}, {pipeline_mode = #tpu.pipeline_mode<synchronous>, transform_indices = @transform_4, window_bounds = array<i64: 8, 56>}, {pipeline_mode = #tpu.pipeline_mode<synchronous>, transform_indices = @transform_5, window_bounds = array<i64: 8, 1>}, {transform_indices = @transform_6, window_bounds = array<i64: 1, 8, 128>}]} {
    %cst = arith.constant 0.000000e+00 : f32
    %0 = vector.broadcast %cst : f32 to vector<4x128xf32>
    %c4 = arith.constant 4 : index
    %c0 = arith.constant 0 : index
    %1 = vector.load %arg8[%c4, %c0] : memref<56x128xf32, #tpu.memory_space<vmem>>, vector<4x128xf32>
    tpu.vector_store %arg8[%c4, %c0], %0 {strides = array<i32>} : memref<56x128xf32, #tpu.memory_space<vmem>>, vector<4x128xf32>,
    %c12 = arith.constant 12 : index
    %c0_0 = arith.constant 0 : index
    %2 = vector.load %arg8[%c12, %c0_0] : memref<56x128xf32, #tpu.memory_space<vmem>>, vector<4x128xf32>
    tpu.vector_store %arg8[%c12, %c0_0], %0 {strides = array<i32>} : memref<56x128xf32, #tpu.memory_space<vmem>>, vector<4x128xf32>,
    %c20 = arith.constant 20 : index
    %c0_1 = arith.constant 0 : index
    %3 = vector.load %arg8[%c20, %c0_1] : memref<56x128xf32, #tpu.memory_space<vmem>>, vector<4x128xf32>
    tpu.vector_store %arg8[%c20, %c0_1], %0 {strides = array<i32>} : memref<56x128xf32, #tpu.memory_space<vmem>>, vector<4x128xf32>,
    %c28 = arith.constant 28 : index
    %c0_2 = arith.constant 0 : index
    %4 = vector.load %arg8[%c28, %c0_2] : memref<56x128xf32, #tpu.memory_space<vmem>>, vector<4x128xf32>
    tpu.vector_store %arg8[%c28, %c0_2], %0 {strides = array<i32>} : memref<56x128xf32, #tpu.memory_space<vmem>>, vector<4x128xf32>,
    %c36 = arith.constant 36 : index
    %c0_3 = arith.constant 0 : index
    %5 = vector.load %arg8[%c36, %c0_3] : memref<56x128xf32, #tpu.memory_space<vmem>>, vector<4x128xf32>
    tpu.vector_store %arg8[%c36, %c0_3], %0 {strides = array<i32>} : memref<56x128xf32, #tpu.memory_space<vmem>>, vector<4x128xf32>,
    %c44 = arith.constant 44 : index
    %c0_4 = arith.constant 0 : index
    %6 = vector.load %arg8[%c44, %c0_4] : memref<56x128xf32, #tpu.memory_space<vmem>>, vector<4x128xf32>
    tpu.vector_store %arg8[%c44, %c0_4], %0 {strides = array<i32>} : memref<56x128xf32, #tpu.memory_space<vmem>>, vector<4x128xf32>,
    %c52 = arith.constant 52 : index
    %c0_5 = arith.constant 0 : index
    %7 = vector.load %arg8[%c52, %c0_5] : memref<56x128xf32, #tpu.memory_space<vmem>>, vector<4x128xf32>
    tpu.vector_store %arg8[%c52, %c0_5], %0 {strides = array<i32>} : memref<56x128xf32, #tpu.memory_space<vmem>>, vector<4x128xf32>,
    %c0_6 = arith.constant 0 : index
    %c0_7 = arith.constant 0 : index
    %c0_8 = arith.constant 0 : index
    %8 = vector.load %arg1[%c0_6, %c0_7, %c0_8] : memref<1x4x16xf32, #tpu.memory_space<vmem>>, vector<1x4x16xf32>
    %9 = vector.shape_cast %8 : vector<1x4x16xf32> to vector<4x16xf32>
    %c0_9 = arith.constant 0 : index
    %c0_10 = arith.constant 0 : index
    %10 = vector.load %arg8[%c0_9, %c0_10] : memref<56x128xf32, #tpu.memory_space<vmem>>, vector<4x16xf32>
    tpu.vector_store %arg8[%c0_9, %c0_10], %9 {strides = array<i32>} : memref<56x128xf32, #tpu.memory_space<vmem>>, vector<4x16xf32>,
    %c0_11 = arith.constant 0 : index
    %c0_12 = arith.constant 0 : index
    %c0_13 = arith.constant 0 : index
    %11 = vector.load %arg2[%c0_11, %c0_12, %c0_13] : memref<1x16x16xf32, #tpu.memory_space<vmem>>, vector<1x16x16xf32>
    %12 = vector.shape_cast %11 : vector<1x16x16xf32> to vector<16x16xf32>
    %cst_14 = arith.constant dense<0.000000e+00> : vector<4x16xf32>
    %13 = tpu.matmul %9, %12, %cst_14 {dimension_numbers = #tpu.dot_dimension_numbers<[1], [0], [0], [1], [0, 0, 1, 1], [], []>} : vector<4x16xf32>, vector<16x16xf32>, vector<4x16xf32> -> vector<4x16xf32>
    %c8 = arith.constant 8 : index
    %c0_15 = arith.constant 0 : index
    %14 = vector.load %arg8[%c8, %c0_15] : memref<56x128xf32, #tpu.memory_space<vmem>>, vector<4x16xf32>
    tpu.vector_store %arg8[%c8, %c0_15], %13 {strides = array<i32>} : memref<56x128xf32, #tpu.memory_space<vmem>>, vector<4x16xf32>,
    %cst_16 = arith.constant dense<0.000000e+00> : vector<4x16xf32>
    %15 = tpu.matmul %13, %12, %cst_16 {dimension_numbers = #tpu.dot_dimension_numbers<[1], [0], [0], [1], [0, 0, 1, 1], [], []>} : vector<4x16xf32>, vector<16x16xf32>, vector<4x16xf32> -> vector<4x16xf32>
    %c16 = arith.constant 16 : index
    %c0_17 = arith.constant 0 : index
    %16 = vector.load %arg8[%c16, %c0_17] : memref<56x128xf32, #tpu.memory_space<vmem>>, vector<4x16xf32>
    tpu.vector_store %arg8[%c16, %c0_17], %15 {strides = array<i32>} : memref<56x128xf32, #tpu.memory_space<vmem>>, vector<4x16xf32>,
    %c0_18 = arith.constant 0 : index
    %c0_19 = arith.constant 0 : index
    %c0_20 = arith.constant 0 : index
    %17 = vector.load %arg3[%c0_18, %c0_19, %c0_20] : memref<1x16x16xf32, #tpu.memory_space<vmem>>, vector<1x16x16xf32>
    %18 = vector.shape_cast %17 : vector<1x16x16xf32> to vector<16x16xf32>
    %cst_21 = arith.constant dense<0.000000e+00> : vector<4x16xf32>
    %19 = tpu.matmul %9, %18, %cst_21 {dimension_numbers = #tpu.dot_dimension_numbers<[1], [0], [0], [1], [0, 0, 1, 1], [], []>} : vector<4x16xf32>, vector<16x16xf32>, vector<4x16xf32> -> vector<4x16xf32>
    %c24 = arith.constant 24 : index
    %c0_22 = arith.constant 0 : index
    %20 = vector.load %arg8[%c24, %c0_22] : memref<56x128xf32, #tpu.memory_space<vmem>>, vector<4x16xf32>
    tpu.vector_store %arg8[%c24, %c0_22], %19 {strides = array<i32>} : memref<56x128xf32, #tpu.memory_space<vmem>>, vector<4x16xf32>,
    %cst_23 = arith.constant dense<0.000000e+00> : vector<4x16xf32>
    %21 = tpu.matmul %19, %18, %cst_23 {dimension_numbers = #tpu.dot_dimension_numbers<[1], [0], [0], [1], [0, 0, 1, 1], [], []>} : vector<4x16xf32>, vector<16x16xf32>, vector<4x16xf32> -> vector<4x16xf32>
    %c32 = arith.constant 32 : index
    %c0_24 = arith.constant 0 : index
    %22 = vector.load %arg8[%c32, %c0_24] : memref<56x128xf32, #tpu.memory_space<vmem>>, vector<4x16xf32>
    tpu.vector_store %arg8[%c32, %c0_24], %21 {strides = array<i32>} : memref<56x128xf32, #tpu.memory_space<vmem>>, vector<4x16xf32>,
    %c0_25 = arith.constant 0 : index
    %c0_26 = arith.constant 0 : index
    %c0_27 = arith.constant 0 : index
    %23 = vector.load %arg4[%c0_25, %c0_26, %c0_27] : memref<1x16x16xf32, #tpu.memory_space<vmem>>, vector<1x16x16xf32>
    %24 = vector.shape_cast %23 : vector<1x16x16xf32> to vector<16x16xf32>
    %cst_28 = arith.constant dense<0.000000e+00> : vector<4x16xf32>
    %25 = tpu.matmul %9, %24, %cst_28 {dimension_numbers = #tpu.dot_dimension_numbers<[1], [0], [0], [1], [0, 0, 1, 1], [], []>} : vector<4x16xf32>, vector<16x16xf32>, vector<4x16xf32> -> vector<4x16xf32>
    %c40 = arith.constant 40 : index
    %c0_29 = arith.constant 0 : index
    %26 = vector.load %arg8[%c40, %c0_29] : memref<56x128xf32, #tpu.memory_space<vmem>>, vector<4x16xf32>
    tpu.vector_store %arg8[%c40, %c0_29], %25 {strides = array<i32>} : memref<56x128xf32, #tpu.memory_space<vmem>>, vector<4x16xf32>,
    %cst_30 = arith.constant dense<0.000000e+00> : vector<4x16xf32>
    %27 = tpu.matmul %25, %24, %cst_30 {dimension_numbers = #tpu.dot_dimension_numbers<[1], [0], [0], [1], [0, 0, 1, 1], [], []>} : vector<4x16xf32>, vector<16x16xf32>, vector<4x16xf32> -> vector<4x16xf32>
    %c48 = arith.constant 48 : index
    %c0_31 = arith.constant 0 : index
    %28 = vector.load %arg8[%c48, %c0_31] : memref<56x128xf32, #tpu.memory_space<vmem>>, vector<4x16xf32>
    tpu.vector_store %arg8[%c48, %c0_31], %27 {strides = array<i32>} : memref<56x128xf32, #tpu.memory_space<vmem>>, vector<4x16xf32>,
    %c0_32 = arith.constant 0 : index
    %c0_33 = arith.constant 0 : index
    %29 = vector.load %arg5[%c0_32, %c0_33] : memref<8x56xf32, #tpu.memory_space<vmem>>, vector<8x56xf32>
    %c0_34 = arith.constant 0 : index
    %c0_35 = arith.constant 0 : index
    %30 = vector.load %arg6[%c0_34, %c0_35] : memref<8x1xf32, #tpu.memory_space<vmem>>, vector<8x1xf32>
    %c0_36 = arith.constant 0 : index
    %c0_37 = arith.constant 0 : index
    %31 = vector.load %arg8[%c0_36, %c0_37] : memref<56x128xf32, #tpu.memory_space<vmem>>, vector<56x128xf32>
    %cst_38 = arith.constant dense<0.000000e+00> : vector<8x128xf32>
    %32 = tpu.matmul %29, %31, %cst_38 {dimension_numbers = #tpu.dot_dimension_numbers<[1], [0], [0], [1], [0, 0, 1, 1], [], []>} : vector<8x56xf32>, vector<56x128xf32>, vector<8x128xf32> -> vector<8x128xf32>
    %33 = vector.broadcast %30 : vector<8x1xf32> to vector<8x128xf32>
    %34 = arith.addf %32, %33 : vector<8x128xf32>
    %c0_39 = arith.constant 0 : index
    %c0_40 = arith.constant 0 : index
    %c0_41 = arith.constant 0 : index
    %35 = vector.load %arg7[%c0_39, %c0_40, %c0_41] : memref<1x8x128xf32, #tpu.memory_space<vmem>>, vector<1x8x128xf32>
    %36 = vector.shape_cast %35 : vector<1x8x128xf32> to vector<8x128xf32>
    %37 = vector.shape_cast %34 : vector<8x128xf32> to vector<1x8x128xf32>
    tpu.vector_store %arg7[%c0_39, %c0_40, %c0_41], %37 {strides = array<i32>} : memref<1x8x128xf32, #tpu.memory_space<vmem>>, vector<1x8x128xf32>,
    return
  }
  func.func @transform_0(%arg0: i32) -> (i32, i32, i32) {
    %c0_i32 = arith.constant 0 : i32
    %c0_i32_0 = arith.constant 0 : i32
    %c0_i32_1 = arith.constant 0 : i32
    return %arg0, %c0_i32, %c0_i32_0 : i32, i32, i32
  }
  func.func @transform_1(%arg0: i32) -> (i32, i32, i32) {
    %c0_i32 = arith.constant 0 : i32
    %c0_i32_0 = arith.constant 0 : i32
    %c0_i32_1 = arith.constant 0 : i32
    return %arg0, %c0_i32, %c0_i32_0 : i32, i32, i32
  }
  func.func @transform_2(%arg0: i32) -> (i32, i32, i32) {
    %c0_i32 = arith.constant 0 : i32
    %c0_i32_0 = arith.constant 0 : i32
    %c0_i32_1 = arith.constant 0 : i32
    return %arg0, %c0_i32, %c0_i32_0 : i32, i32, i32
  }
  func.func @transform_3(%arg0: i32) -> (i32, i32, i32) {
    %c0_i32 = arith.constant 0 : i32
    %c0_i32_0 = arith.constant 0 : i32
    %c0_i32_1 = arith.constant 0 : i32
    return %arg0, %c0_i32, %c0_i32_0 : i32, i32, i32
  }
  func.func @transform_4(%arg0: i32) -> (i32, i32) {
    %c0_i32 = arith.constant 0 : i32
    %c0_i32_0 = arith.constant 0 : i32
    %c0_i32_1 = arith.constant 0 : i32
    return %c0_i32, %c0_i32_0 : i32, i32
  }
  func.func @transform_5(%arg0: i32) -> (i32, i32) {
    %c0_i32 = arith.constant 0 : i32
    %c0_i32_0 = arith.constant 0 : i32
    %c0_i32_1 = arith.constant 0 : i32
    return %c0_i32, %c0_i32_0 : i32, i32
  }
  func.func @transform_6(%arg0: i32) -> (i32, i32, i32) {
    %c0_i32 = arith.constant 0 : i32
    %c0_i32_0 = arith.constant 0 : i32
    %c0_i32_1 = arith.constant 0 : i32
    return %arg0, %c0_i32, %c0_i32_0 : i32, i32, i32
  }
}

</mosaic_0001>

<bundles_post_ra>
// kernel: tpu_custom_call.1
= control target key start
LH: loop header
LB: loop body
LE: loop exit
PB: predicated region body
PF: predicated region fallthrough
CT: control target
= control target key end

     0   :  { %s1779_s0 = inlined_call_operand.vmem [shape: f32[2,4,16], index: 0, kind: input, shape index: {}]   ;;  %s1780_s1 = inlined_call_operand.hbm [shape: f32[2,16,16], index: 1, kind: input, shape index: {}]   ;;  %s1781_s2 = inlined_call_operand.hbm [shape: f32[2,16,16], index: 2, kind: input, shape index: {}]   ;;  %s1782_s3 = inlined_call_operand.hbm [shape: f32[2,16,16], index: 3, kind: input, shape index: {}]   ;;  %s1783_s4 = inlined_call_operand.vmem [shape: f32[8,56], index: 4, kind: input, shape index: {}]   ;;  %s1784_s5 = inlined_call_operand.vmem [shape: f32[8,1], index: 5, kind: input, shape index: {}]   ;;  %s1785_s6 = inlined_call_operand.hbm [shape: f32[2,8,128], index: 6, kind: output, shape index: {}]  }
   0x1   :  { %1795 = sst [smem:[#allocation15_spill]] %s1780_s1 }
   0x2   :  { %1796 = sst [smem:[#allocation16_spill]] %s1781_s2 }
   0x3   :  { %11 = vsyncpa [#allocation4], 0 }
   0x4   :  { %13 = vsyncpa [#allocation4 + $0x1], 0 }
   0x5   :  { %14 = vsyncpa [#allocation7], 0 }
   0x6   :  { %16 = vsyncpa [#allocation7 + $0x1], 0 }
   0x7   :  { %17 = vsyncpa [#allocation5], 0 }
   0x8   :  { %19 = vsyncpa [#allocation5 + $0x1], 0  ;;  %s1461_s21 = smov 0   ;;  %s1463_s22 = smov 0  }
   0x9   :  { %s1465_s23 = smov 0   ;;  %s1467_s24 = smov 0  }
   0xa LB: > { %s1482_s25 = sadd.s32 4294967295, %s1414_s24   ;;  %s1047_s26 = sadd.s32 4294967294, %s1414_s24   ;;  %s1414_s24 = sphi %s1467_s24, %s1816_s24   ;;  %s1410_s23 = sphi %s1465_s23, %s1820_s23   ;;  %s1406_s22 = sphi %s1463_s22, %s1819_s22   ;;  %s1402_s21 = sphi %s1461_s21, %s1818_s21  }
   0xb   : > { %s1486_s27 = sadd.s32 1, %s1414_s24   ;;  %s58_s28 = sadd.s32 1, %s1410_s23 }
   0xc   : > { %1797 = sst [smem:[#allocation13_spill]] %s1486_s27  ;;  %s55_s29 = ssub.s32 %s1414_s24, %s1486_s27 }
   0xd   : > { %p65_p0 = scmp.ne.s32.totalorder %s1410_s23, %s1406_s22  ;;  %p56_p1 = scmp.eq.s32.totalorder %s55_s29, 0 }
   0xe   : > { %p66_p2 = scmp.eq.s32.totalorder %s1414_s24, 0  ;;  %p71_p3 = scmp.ne.s32.totalorder %s1406_s22, %s1402_s21 }
   0xf   : > { %p72_p4 = scmp.eq.s32.totalorder %s1482_s25, 0  ;;  %p189_p7 = scmp.eq.s32.totalorder %s1482_s25, 1 }
  0x10   : > { %s1498_s30 = scalar_select %p56_p1, %s1410_s23, %s58_s28  }
  0x11   : > { %p67_p5 = por %p66_p2, %p65_p0  ;;  %p1500_p6 = por %p72_p4, %p71_p3 }
  0x12   : > { %1798 = sst [smem:[#allocation14_spill]] %s1498_s30  ;;  %p195_p8 = scmp.eq.s32.totalorder %s1047_s26, 1 }
  0x13   : > { %s1799_s7 = scalar_select %p1500_p6, 1, 0 }
  0x14   : > { %p1213_p10 = scmp.lt.s32.totalorder %s1414_s24, 2  ;;  %p1507_p11 = por %p189_p7, %p65_p0 }
  0x15   : > { %p1511_p12 = por %p195_p8, %p71_p3  ;;  %s1786_s10 = sand.u32 1, %s1410_s23  }
  0x16   : > { %s1800_s8 = scalar_select %p1507_p11, 1, 0 }
  0x17   : > { %s1801_s9 = scalar_select %p1511_p12, 1, 0 }
  0x18   : > { %s1517_s11 = sshll.u32 %s1414_s24, 8  ;;  %s1521_s12 = sshll.u32 %s1786_s10, 4 }
  0x19   : > { %p1523_p13 = pnand %p1213_p10, %p67_p5  ;;  %s249_s14 = sand.u32 1, %s1414_s24  }
  0x1a   : > { %s1803_s2 = sld [smem:[#allocation16_spill]]  ;;  %s253_s18 = scalar_lea.vmem [#allocation6], %s1521_s12 }
  0x1b   : > { %s260_s19 = sshll.u32 %s253_s18, 4  ;;  %s1538_s20 = scalar_lea.sflag [#allocation7], %s249_s14  ;;  %s1535_s19 = int_to_ptr.vmem [resolvable:$true] %s260_s19 }
  0x1c   : > { %p1544_p2 = pneg %p1523_p13 }
  0x20   : > { %s1532_s17 = scalar_lea.hbm %s1803_s2, %s1517_s11  ;;  %s1259_s16 = scalar_lea.hbm %s1803_s2, 512 }
  0x21   : > { %s1254_s26 = scalar_lea.hbm %s1532_s17, 256  ;;  %p1260_p5 = scmp.lt.u32.totalorder %s1532_s17, %s1803_s2 }
  0x22   : > { %p1255_p1 = scmp.ne.s32.totalorder %s1532_s17, %s1254_s26  ;;  %p1261_p7 = scmp.lt.u32.totalorder %s1259_s16, %s1254_s26 }
  0x23   : > { %p1263_p10 = scmp.lt.u32.totalorder %s1254_s26, %s1532_s17 }
  0x24   : > { %p1257_p3 = pnand %p1544_p2, %p1255_p1  ;;  %p1262_p8 = por %p1261_p7, %p1260_p5 }
  0x26   : > { %p1258_p4 = pneg %p1257_p3  ;;  %p1264_p9 = por %p1263_p10, %p1262_p8 }
  0x28   : > { %p1265_p0 = pnand %p1264_p9, %p1258_p4 }
  0x2a   : > { %1268 = shalt.err (!%p1265_p0)
}
  0x2b   : > { %s1269_s14 = scalar_lea.vmem %s1535_s19, 256  ;;  %s1416_s29 = smov [#allocation6]  }
  0x2c   : > { %p1270_p1 = scmp.ne.s32.totalorder %s1535_s19, %s1269_s14  ;;  %s1274_s15 = sshll.u32 %s1416_s29, 4  ;;  %s1275_s15 = int_to_ptr.vmem [resolvable:$false] %s1274_s15 }
  0x2d   : > { %s1276_s10 = scalar_lea.vmem %s1275_s15, 512  ;;  %p1277_p11 = scmp.lt.s32.totalorder %s1535_s19, %s1275_s15 }
  0x2e   : > { %p1272_p3 = pnand %p1270_p1, %p1544_p2  ;;  %p1278_p6 = scmp.lt.s32.totalorder %s1276_s10, %s1269_s14 }
  0x30   : > { %p1273_p12 = pneg %p1272_p3  ;;  %p1279_p5 = por %p1278_p6, %p1277_p11 }
  0x32   : > { %p1280_p7 = pnand %p1279_p5, %p1273_p12 }
  0x34   : > { %1283 = shalt.err (!%p1280_p7)
}
  0x35   : > { %s1789_s26 = smov 128   ;;  %s1791_s16 = smov 8  }
  0x36   : > { %1205 = dma.hbm_to_vmem [thread:$0]  (!%p1523_p13), %s1532_s17, 256, %s1535_s19, %s1538_s20, %s1789_s26, %s1789_s26, %s1791_s16  }
  0x37   : > { %p289_p6 = scmp.lt.s32.totalorder %s1414_s24, 3  ;;  %s1805_s1 = sld [smem:[#allocation15_spill]] }
  0x38   : > { %p1806_p9 = scmp.ge.s32.totalorder %s1414_s24, 1  ;;  %s232_s10 = scalar_lea.vmem [#allocation3], %s1521_s12 }
  0x39   : > { %s239_s2 = sshll.u32 %s232_s10, 4  ;;  %s1808_s17 = sand.u32 1, %s1410_s23   ;;  %s1585_s2 = int_to_ptr.vmem [resolvable:$true] %s239_s2 }
  0x3a   : > { %p1580_p11 = pnand %p1806_p9, %p289_p6  ;;  %s1589_s19 = scalar_lea.sflag [#allocation4], %s1808_s17 }
  0x3c   : > { %s1807_s15 = scalar_select %p1580_p11, 1, 0 }
  0x3d   : > { %s1576_s29 = scalar_lea.hbm %s1805_s1, %s1517_s11  ;;  %s1289_s16 = scalar_lea.hbm %s1805_s1, 512 }
  0x3e   : > { %s1284_s26 = scalar_lea.hbm %s1576_s29, 256  ;;  %p1290_p8 = scmp.lt.u32.totalorder %s1576_s29, %s1805_s1 }
  0x3f   : > { %p1285_p12 = scmp.ne.s32.totalorder %s1576_s29, %s1284_s26  ;;  %p1291_p10 = scmp.lt.u32.totalorder %s1289_s16, %s1284_s26 }
  0x40   : > { %p1293_p3 = scmp.lt.u32.totalorder %s1284_s26, %s1576_s29 }
  0x41   : > { %p1287_p0 = pnand %p1285_p12, %p1544_p2  ;;  %p1292_p1 = por %p1291_p10, %p1290_p8 }
  0x43   : > { %p1288_p4 = pneg %p1287_p0  ;;  %p1294_p5 = por %p1293_p3, %p1292_p1 }
  0x45   : > { %p1295_p7 = pnand %p1294_p5, %p1288_p4 }
  0x47   : > { %1298 = shalt.err (!%p1295_p7)
}
  0x48   : > { %s1299_s10 = scalar_lea.vmem %s1585_s2, 256  ;;  %s1419_s17 = smov [#allocation3]  }
  0x49   : > { %p1300_p6 = scmp.ne.s32.totalorder %s1585_s2, %s1299_s10  ;;  %s1304_s18 = sshll.u32 %s1419_s17, 4  ;;  %s1305_s18 = int_to_ptr.vmem [resolvable:$false] %s1304_s18 }
  0x4a   : > { %s1306_s27 = scalar_lea.vmem %s1305_s18, 512  ;;  %p1307_p0 = scmp.lt.s32.totalorder %s1585_s2, %s1305_s18 }
  0x4b   : > { %p1302_p9 = pnand %p1300_p6, %p1544_p2  ;;  %p1308_p11 = scmp.lt.s32.totalorder %s1306_s27, %s1299_s10 }
  0x4d   : > { %p1303_p12 = pneg %p1302_p9  ;;  %p1309_p8 = por %p1308_p11, %p1307_p0 }
  0x4f   : > { %p1310_p10 = pnand %p1309_p8, %p1303_p12 }
  0x51   : > { %1313 = shalt.err (!%p1310_p10)
}
  0x52   : > { %s1809_s30 = smov 8   ;;  %s1810_s26 = smov 128  }
  0x53   : > { %1202 = dma.hbm_to_vmem [thread:$0]  (!%p1523_p13), %s1576_s29, 256, %s1585_s2, %s1589_s19, %s1810_s26, %s1810_s26, %s1809_s30  }
  0x54   : > { %s1620_s17 = scalar_lea.hbm %s1782_s3, %s1517_s11  ;;  %s274_s10 = scalar_lea.vmem [#allocation8], %s1521_s12 }
  0x55   : > { %s281_s18 = sshll.u32 %s274_s10, 4  ;;  %s1314_s27 = scalar_lea.hbm %s1620_s17, 256  ;;  %s1623_s18 = int_to_ptr.vmem [resolvable:$true] %s281_s18 }
  0x56   : > { %p1315_p11 = scmp.ne.s32.totalorder %s1620_s17, %s1314_s27  ;;  %s1319_s29 = scalar_lea.hbm %s1782_s3, 512 }
  0x57   : > { %p1320_p3 = scmp.lt.u32.totalorder %s1620_s17, %s1782_s3  ;;  %p1321_p5 = scmp.lt.u32.totalorder %s1319_s29, %s1314_s27 }
  0x58   : > { %p1317_p4 = pnand %p1315_p11, %p1544_p2  ;;  %p1323_p6 = scmp.lt.u32.totalorder %s1314_s27, %s1620_s17 }
  0x59   : > { %p1322_p7 = por %p1321_p5, %p1320_p3 }
  0x5a   : > { %p1318_p1 = pneg %p1317_p4 }
  0x5b   : > { %p1324_p9 = por %p1323_p6, %p1322_p7 }
  0x5d   : > { %p1325_p12 = pnand %p1324_p9, %p1318_p1 }
  0x5f   : > { %1328 = shalt.err (!%p1325_p12)
}
  0x60   : > { %s1329_s12 = scalar_lea.vmem %s1623_s18, 256  ;;  %s1420_s1 = smov [#allocation8]  }
  0x61   : > { %p1330_p0 = scmp.ne.s32.totalorder %s1623_s18, %s1329_s12  ;;  %s1334_s16 = sshll.u32 %s1420_s1, 4  ;;  %s1335_s16 = int_to_ptr.vmem [resolvable:$false] %s1334_s16 }
  0x62   : > { %s1336_s14 = scalar_lea.vmem %s1335_s16, 512  ;;  %p1337_p11 = scmp.lt.s32.totalorder %s1623_s18, %s1335_s16 }
  0x63   : > { %p1332_p8 = pnand %p1330_p0, %p1544_p2  ;;  %p1338_p4 = scmp.lt.s32.totalorder %s1336_s14, %s1329_s12 }
  0x65   : > { %p1333_p10 = pneg %p1332_p8  ;;  %p1339_p3 = por %p1338_p4, %p1337_p11 }
  0x67   : > { %p1340_p5 = pnand %p1339_p3, %p1333_p10 }
  0x69   : > { %1343 = shalt.err (!%p1340_p5)
}
  0x6a   : > { %1208 = dma.hbm_to_vmem [thread:$0]  (!%p1523_p13), %s1620_s17, 256, %s1623_s18, %s1538_s20, %s1810_s26, %s1810_s26, %s1809_s30  }
  0x6b   : > { %p1811_p2 = scmp.ne.s32.totalorder %s1807_s15, 0 }
  0x6c   : > { %s1653_s28 = sand.u32 (!%p1811_p2), 1, %s1406_s22   ;;  %p1812_p1 = scmp.ne.s32.totalorder (!%p1811_p2), %s1799_s7, 0 }
  0x6d   : > { %293 = sbr.rel (%p1811_p2) target bundleno = 1010 (0x3f2), region = 44  ;;  %s1656_s10 = sshll.u32 (!%p1811_p2), %s1653_s28, 4 }
  0x6e   : > { %s296_s13 = scalar_lea.sflag (!%p1811_p2), [#allocation4], %s1653_s28  ;;  %s299_s27 = scalar_lea.vmem (!%p1811_p2), [#allocation3], %s1656_s10 }
  0x74   : > { %1389 = dma.done.wait (%p1812_p1), %s296_s13, 256  }
  0x75   : > { %1391 = vsyncadd (%p1812_p1), %s296_s13, 4294967040  ;;  %s304_s20 = sand.u32 1, %s1482_s25   ;;  %s308_s30 = scalar_lea.vmem [#allocation6], %s1656_s10 }
  0x76   : > { %s305_s15 = scalar_lea.sflag [#allocation7], %s304_s20 }
  0x77   : > { %1393 = dma.done.wait (%p1812_p1), %s305_s15, 512  }
  0x78   : > { %1395 = vsyncadd (%p1812_p1), %s305_s15, 4294966784  ;;  %p360_p13 = scmp.lt.s32.totalorder %s1482_s25, 1  ;;  %v1421_v0 = vmov 0.0|0.0   ;;  %vm1422_vm0 = vmmov 0   ;;  %v1423_v1 = vmov 0.0   ;;  %vm372_vm1 = vcmask 125952  }
  0x79   : > { %1164 = vmatprep.subr.bf16.mxu1 %v1421_v0  ;;  %1109 = vmatprep.mubr.msk.f32.mxu1 %vm1422_vm0, %v1423_v1  ;;  %364 = vst [vmem:[#allocation2 + $0x4] sm:$0xf] %v1423_v1  ;;  %365 = vst [vmem:[#allocation2 + $0xc] sm:$0xf] %v1423_v1  ;;  %v374_v2 = vld [vmem:[%s299_s27] sm:$0xff]  ;;  %v375_v3 = vld [vmem:[%s299_s27 + $0x8] sm:$0xff] }
  0x7a   : > { %366 = vst [vmem:[#allocation2 + $0x14] sm:$0xf] %v1423_v1  ;;  %367 = vst [vmem:[#allocation2 + $0x1c] sm:$0xf] %v1423_v1  ;;  %s361_s7 = scalar_select %p360_p13, %s1482_s25, 1  ;;  %1176 = vmatprep.subr.bf16.mxu0 %v1421_v0  ;;  %1137 = vmatprep.mubr.msk.f32.mxu0 %vm1422_vm0, %v1423_v1  ;;  %v1165_v5 = vpack.c.bf16 %v375_v3, %v374_v2  ;;  %vm376_vm2 = vcmask 130048  }
  0x7b   : > { %368 = vst [vmem:[#allocation2 + $0x24] sm:$0xf] %v1423_v1  ;;  %369 = vst [vmem:[#allocation2 + $0x2c] sm:$0xf] %v1423_v1  ;;  %s317_s29 = scalar_lea.vmem [#allocation8], %s1656_s10  ;;  %v525_v9 = vld [vmem:[%s308_s30] sm:$0xff] }
  0x7c   : > { %370 = vst [vmem:[#allocation2 + $0x34] sm:$0xf] %v1423_v1  ;;  %s1064_s26 = sshll.u32 %s361_s7, 2  ;;  %1166 = vmatpush3.bf16.msra.mxu1 %v1165_v5  ;;  %v672_v6 = vld [vmem:[%s317_s29] sm:$0xff]  ;;  %v673_v7 = vld [vmem:[%s317_s29 + $0x8] sm:$0xff]  ;;  %v1424_v27 = vmov 0  }
  0x7d   : > { %s363_s2 = scalar_lea.vmem %s1779_s0, %s1064_s26  ;;  %1167 = vmatprep.subr.bf16.mxu1 %v1421_v0  ;;  %v1177_v8 = vpack.c.bf16 %v673_v7, %v672_v6  ;;  %v526_v10 = vld [vmem:[%s308_s30 + $0x8] sm:$0xff]  ;;  %1253 = vset.pattern.permute.xlu0 %v1424_v27  ;;  %vm833_vm3 = vcmask 457728   ;;  %s1063_s16 = sshll.u32 %s1653_s28, 3 }
  0x7e   : > { %v371_v4 = vld [vmem:[%s363_s2] sm:$0xf]  ;;  %v1171_v11 = vpack.c.bf16 %v526_v10, %v525_v9  ;;  %s1073_s14 = sshll.u32 %s1482_s25, 7  ;;  %s359_s10 = scalar_lea.vmem [#allocation9], %s1063_s16 }
  0x7f   : > { %373 = vst.msk [vmem:[#allocation2] sm:$0xf] %vm372_vm1, %v371_v4  ;;  %1110 = vmatmul.mubr.msk.f32.vlgmr.msra.gmra.mrb[0].mxu1 %vm376_vm2, %v371_v4  ;;  %1178 = vmatpush3.bf16.msra.mxu0 %v1177_v8  ;;  %v820_v26 = vld [vmem:[%s1784_s5] sm:$0xff]  ;;  %s922_s13 = sshll.u32 %s359_s10, 4  ;;  %s1735_s15 = scalar_lea.hbm %s1785_s6, %s1073_s14  ;;  %s1737_s13 = int_to_ptr.vmem [resolvable:$true] %s922_s13 }
  0x80   : > { %1169 = vmatpush3.bf16.msra.mxu1 %v1165_v5  ;;  %1116 = vmatprep.mubr.msk.f32.mxu1 %vm1422_vm0, %v1423_v1  ;;  %v819_v36 = vld [vmem:[%s1783_s4] sm:$0xff]  ;;  %s909_s30 = scalar_lea.sflag [#allocation5], %s1653_s28  ;;  %s1344_s7 = scalar_lea.vmem %s1737_s13, 128 }
  0x81   : > { %1170 = vmatprep.subr.bf16.mxu1 %v1421_v0  ;;  %1182 = vmatprep.subr.bf16.mxu0 %v1421_v0  ;;  %p1345_p7 = scmp.ne.s32.totalorder %s1737_s13, %s1344_s7  ;;  %p1813_p6 = scmp.ne.s32.totalorder %s1800_s8, 0 }
  0x82   : > { %1138 = vmatmul.mubr.msk.f32.vlgmr.msra.gmra.mrb[0].mxu0 %vm376_vm2, %v371_v4  ;;  %830 = vperm.xlu0 %1253, %v820_v26   ;;  %s1425_s25 = smov [#allocation9]  }
  0x83   : > { %1161 = vmatprep.mubr.msk.f32.mxu0 %vm1422_vm0, %v1423_v1  ;;  %p1346_p9 = pnand %p1345_p7, %p1813_p6  ;;  %s1348_s26 = sshll.u32 %s1425_s25, 4  ;;  %s1349_s26 = int_to_ptr.vmem [resolvable:$false] %s1348_s26 }
  0x84   : > { %s1350_s17 = scalar_lea.vmem %s1349_s26, 256  ;;  %p1351_p0 = scmp.lt.s32.totalorder %s1737_s13, %s1349_s26 }
  0x85   : > { %p1347_p12 = pneg %p1346_p9  ;;  %p1352_p8 = scmp.lt.s32.totalorder %s1350_s17, %s1344_s7 }
  0x86   : > { %v821_v14 = vld [vmem:[#allocation2] sm:$0xff] }
  0x87   : > { %p1353_p10 = por %p1352_p8, %p1351_p0 }
  0x89   : > { %p1354_p11 = pnand %p1353_p10, %p1347_p12 }
 0x101   : > { %v831_v37 = vpop.permute.xlu0 %830 }
 0x152   : > { %v446_v12 = vpop.f32.mrb[0].mxu1 }
 0x153   : > { %450 = vst.msk [vmem:[#allocation2 + $0x8] sm:$0xf] %vm372_vm1, %v446_v12  ;;  %v1111_v13 = vpop.f32.mrb[1].mxu1  ;;  %1117 = vmatmul.mubr.msk.f32.vlgmr.msra.gmra.mrb[2].mxu1 %vm376_vm2, %v446_v12 }
 0x154   : > { %1172 = vmatpush3.bf16.msra.mxu1 %v1171_v11  ;;  %1123 = vmatprep.mubr.msk.f32.mxu1 %vm1422_vm0, %v1423_v1 }
 0x155   : > { %1173 = vmatprep.subr.bf16.mxu1 %v1421_v0  ;;  %v740_v17 = vpop.f32.mrb[0].mxu0 }
 0x156   : > { %744 = vst.msk [vmem:[#allocation2 + $0x28] sm:$0xf] %vm372_vm1, %v740_v17  ;;  %v1139_v18 = vpop.f32.mrb[1].mxu0 }
 0x157   : > { %1124 = vmatmul.mubr.msk.f32.vlgmr.msra.gmra.mrb[4].mxu1 %vm376_vm2, %v371_v4 }
 0x158   : > { %1175 = vmatpush3.bf16.msra.mxu1 %v1171_v11  ;;  %1130 = vmatprep.mubr.msk.f32.mxu1 %vm1422_vm0, %v1423_v1 }
 0x159   : > { %1179 = vmatprep.subr.bf16.mxu1 %v1421_v0 }
 0x15a   : > { %v822_v15 = vld [vmem:[#allocation2 + $0x8] sm:$0xff] }
 0x15b   : > { %v1183_v16 = vpack.c.bf16 %v822_v15, %v821_v14 }
 0x15d   : > { %1184 = vmatpush3.bf16.msra.mxu0 %v1183_v16  ;;  %v826_v33 = vld [vmem:[#allocation2 + $0x28] sm:$0xff] }
 0x15e   : > { %1185 = vmatprep.subr.bf16.mxu0 %v1421_v0 }
 0x226   : > { %v520_v19 = vpop.f32.mrb[2].mxu1 }
 0x227   : > { %524 = vst.msk [vmem:[#allocation2 + $0x10] sm:$0xf] %vm372_vm1, %v520_v19  ;;  %v1118_v20 = vpop.f32.mrb[3].mxu1 }
 0x22a   : > { %v593_v21 = vpop.f32.mrb[4].mxu1 }
 0x22b   : > { %597 = vst.msk [vmem:[#allocation2 + $0x18] sm:$0xf] %vm372_vm1, %v593_v21  ;;  %v1125_v22 = vpop.f32.mrb[5].mxu1  ;;  %1131 = vmatmul.mubr.msk.f32.vlgmr.msra.gmra.mrb[6].mxu1 %vm376_vm2, %v593_v21 }
 0x22c   : > { %1181 = vmatpush3.bf16.msra.mxu1 %v1177_v8  ;;  %1144 = vmatprep.mubr.msk.f32.mxu1 %vm1422_vm0, %v1423_v1 }
 0x22e   : > { %v823_v23 = vld [vmem:[#allocation2 + $0x10] sm:$0xff] }
 0x22f   : > { %1145 = vmatmul.mubr.msk.f32.vlgmr.msra.gmra.mrb[8].mxu1 %vm376_vm2, %v740_v17 }
 0x232   : > { %v824_v24 = vld [vmem:[#allocation2 + $0x18] sm:$0xff] }
 0x233   : > { %v1186_v25 = vpack.c.bf16 %v824_v24, %v823_v23 }
 0x235   : > { %1187 = vmatpush3.bf16.msra.mxu0 %v1186_v25 }
 0x236   : > { %1188 = vmatprep.subr.bf16.mxu0 %v1421_v0 }
 0x2fe   : > { %v667_v28 = vpop.f32.mrb[6].mxu1 }
 0x2ff   : > { %671 = vst.msk [vmem:[#allocation2 + $0x20] sm:$0xf] %vm372_vm1, %v667_v28  ;;  %v1132_v29 = vpop.f32.mrb[7].mxu1 }
 0x302   : > { %v814_v30 = vpop.f32.mrb[8].mxu1 }
 0x303   : > { %818 = vst.msk [vmem:[#allocation2 + $0x30] sm:$0xf] %vm372_vm1, %v814_v30  ;;  %v1146_v31 = vpop.f32.mrb[9].mxu1 }
 0x306   : > { %v825_v32 = vld [vmem:[#allocation2 + $0x20] sm:$0xff] }
 0x307   : > { %v1189_v34 = vpack.c.bf16 %v826_v33, %v825_v32 }
 0x309   : > { %1190 = vmatpush3.bf16.msra.mxu0 %v1189_v34 }
 0x30a   : > { %1159 = vmatprep.subr.mxu0 %v1423_v1  ;;  %v827_v35 = vld [vmem:[#allocation2 + $0x30] sm:$0xff] }
 0x30d   : > { %1160 = vmatpush3.msra.mxu0 %v827_v35 }
 0x30e   : > { %1162 = vmatmul.mubr.msk.f32.vlgmr.msra.gmra.mrb[2].mxu0 %vm833_vm3, %v819_v36 }
 0x3e1   : > { %v903_v38 = vpop.f32.mrb[2].mxu0 }
 0x3e2   : > { %v904_v39 = vadd.f32 %v903_v38, %v831_v37  ;;  %v1163_v40 = vpop.f32.mrb[3].mxu0 }
 0x3e4   : > { %907 = vst [vmem:[%s359_s10] sm:$0xff] %v904_v39 }
 0x3e5   : > { %1357 = shalt.err (!%p1354_p11)
}
 0x3e6   : > { %s1358_s28 = scalar_lea.hbm %s1735_s15, 128  ;;  %s1362_s29 = scalar_lea.hbm %s1785_s6, 256 }
 0x3e7   : > { %p1359_p4 = scmp.ne.s32.totalorder %s1735_s15, %s1358_s28  ;;  %p1363_p2 = scmp.lt.u32.totalorder %s1735_s15, %s1785_s6 }
 0x3e8   : > { %p1364_p1 = scmp.lt.u32.totalorder %s1362_s29, %s1358_s28  ;;  %p1366_p7 = scmp.lt.u32.totalorder %s1358_s28, %s1735_s15 }
 0x3e9   : > { %p1360_p3 = pnand %p1359_p4, %p1813_p6 }
 0x3ea   : > { %p1365_p13 = por %p1364_p1, %p1363_p2 }
 0x3eb   : > { %p1361_p5 = pneg %p1360_p3 }
 0x3ec   : > { %p1367_p9 = por %p1366_p7, %p1365_p13 }
 0x3ee   : > { %p1368_p12 = pnand %p1367_p9, %p1361_p5 }
 0x3f0   : > { %1371 = shalt.err (!%p1368_p12)
}
 0x3f1   : > { %1197 = dma.vmem_to_hbm [thread:$0]  (%p1813_p6), %s1737_s13, 128, %s1735_s15, %s909_s30  }
 0x3f2 PF: > { %s934_s12 = sand.u32 1, %s1402_s21   ;;  %p1814_p0 = scmp.ne.s32.totalorder %s1801_s9, 0 }
 0x3f3   : > { %p1815_p8 = scmp.ge.s32.totalorder %s1414_s24, 2  ;;  %s935_s1 = scalar_lea.sflag [#allocation5], %s934_s12 }
 0x3f5   : > { %p1210_p10 = pnand %p1815_p8, %p1814_p0 }
 0x3f7   : > { %1397 = dma.done.wait (!%p1210_p10), %s935_s1, 128  }
 0x3f8   : > { %1399 = vsyncadd (!%p1210_p10), %s935_s1, 4294967168  ;;  %s1816_s24 = sld [smem:[#allocation13_spill]]  ;;  %s1817_s16 = sld [smem:[#allocation14_spill]] }
 0x3f9   : > { %s1818_s21 = smov %s1406_s22  ;;  %s1819_s22 = smov %s1410_s23 }
 0x3fe   : > { %p22_p11 = scmp.ge.s32.totalorder %s1816_s24, 4   ;;  %s1820_s23 = smov %s1817_s16 }
 0x400   :  { %24 = sbr.rel (!%p22_p11) target bundleno = 10 (0xa), region = 116 }
 0x407   :  { %940 = vsyncpa [#allocation4], 1 }
 0x408   :  { %942 = vsyncpa [#allocation4 + $0x1], 1 }
 0x409   :  { %943 = vsyncpa [#allocation7], 1 }
 0x40a   :  { %945 = vsyncpa [#allocation7 + $0x1], 1 }
 0x40b   :  { %946 = vsyncpa [#allocation5], 1 }
 0x40c   :  { %948 = vsyncpa [#allocation5 + $0x1], 1 }

</bundles_post_ra>
